<compile_context>
chip_gen: v6e
topology: v6e:2x2x1
jax: 0.10.0
libtpu: 0.0.40
codegen_flags: <defaults>
</compile_context>

<pallas_src>
import jax
import jax.numpy as jnp
from jax.experimental import pallas as pl
from jax.experimental.pallas import tpu as pltpu

_LANES = 128
_TARGET_TILE_BYTES = 4 * 1024 * 1024  # ~4 MiB per input buffer (see header)


def _cast_kernel(x_ref, o_ref):
    # Elementwise float -> int cast (truncation toward zero), whole tile.
    o_ref[...] = x_ref[...].astype(o_ref.dtype)


def _tiled_cast_2d(x2d: jax.Array, out_dtype) -> jax.Array:
    """Cast a 2D array elementwise with row-tiled HBM streaming."""
    R, C = x2d.shape
    in_itemsize = jnp.dtype(x2d.dtype).itemsize
    out_itemsize = jnp.dtype(out_dtype).itemsize

    # Target ~4 MiB per input tile (double-buffered by the pipeline).
    target_rows = max(8, _TARGET_TILE_BYTES // (C * in_itemsize))
    target_rows = (target_rows // 8) * 8  # sublane-aligned (multiple of 8)

    if R > target_rows:
        rows_per_block = target_rows  # ragged last block handled by Pallas
    else:
        rows_per_block = R  # full-extent block is always a legal shape

    grid = (pl.cdiv(R, rows_per_block),)
    bytes_accessed = R * C * (in_itemsize + out_itemsize)

    return pl.pallas_call(
        _cast_kernel,
        out_shape=jax.ShapeDtypeStruct((R, C), out_dtype),
        grid_spec=pltpu.PrefetchScalarGridSpec(
            num_scalar_prefetch=0,
            grid=grid,
            in_specs=[pl.BlockSpec((rows_per_block, C), lambda i: (i, 0))],
            out_specs=pl.BlockSpec((rows_per_block, C), lambda i: (i, 0)),
        ),
        compiler_params=pltpu.CompilerParams(
            dimension_semantics=("parallel",),
            # 4 buffers x ~4 MiB = ~16 MiB + internal scratch; raise the scoped
            # limit so this is legal on v5e's 16 MiB default while staying well
            # under every generation's physical VMEM (>= 64 MiB).
            vmem_limit_bytes=40 << 20,
        ),
        cost_estimate=pl.CostEstimate(
            flops=0, transcendentals=0, bytes_accessed=bytes_accessed),
    )(x2d)


def pre_embed(x: jax.Array) -> jax.Array:
    """x: [B, 1, S, D] float -> [B, S, D] int32 (torch.long analogue)."""
    assert x.ndim == 4 and x.shape[1] == 1, "expected [B, 1, S, D]"
    B, _, S, D = x.shape
    N = B * S * D

    if N % _LANES == 0:
        # Row-major flatten of [B, 1, S, D] equals the flatten of the squeezed
        # [B, S, D]; an elementwise cast commutes with reshape, so the kernel
        # can operate on a lane-dense (rows, 128) view.
        x2d = x.reshape(N // _LANES, _LANES)
        out2d = _tiled_cast_2d(x2d, jnp.int32)
        return out2d.reshape(B, S, D)

    # Lane-dense fallback: pad the flat array up to the next multiple of 128
    # so the kernel keeps full-width stores (no masked vst.msk path), then
    # slice the padding off in the wrapper.
    pad = (-N) % _LANES
    x_flat = jnp.pad(x.reshape(N), (0, pad))
    x2d = x_flat.reshape((N + pad) // _LANES, _LANES)
    out2d = _tiled_cast_2d(x2d, jnp.int32)
    return out2d.reshape(N + pad)[:N].reshape(B, S, D)


if __name__ == "__main__":
    key = jax.random.PRNGKey(0)

    # Main path: B*S*D divisible by 128 -> direct lane-dense view.
    B, S, D = 2, 8, 32
    k1, k2 = jax.random.split(key)
    x = jax.random.uniform(k1, (B, 1, S, D), dtype=jnp.float32) * 100.0
    y = jax.block_until_ready(pre_embed(x))
    ref = jnp.squeeze(x, axis=1).astype(jnp.int32)
    assert y.shape == (B, S, D)
    assert y.dtype == jnp.int32
    assert bool(jnp.all(y == ref))

    # Fallback path: B*S*D NOT divisible by 128 -> padded lane-dense view.
    B2, S2, D2 = 2, 8, 20
    x2 = jax.random.uniform(k2, (B2, 1, S2, D2), dtype=jnp.float32) * 100.0
    y2 = jax.block_until_ready(pre_embed(x2))
    ref2 = jnp.squeeze(x2, axis=1).astype(jnp.int32)
    assert y2.shape == (B2, S2, D2)
    assert y2.dtype == jnp.int32
    assert bool(jnp.all(y2 == ref2))

    print("KERNEL_OK")
</pallas_src>

<mosaic_0001>
module attributes {stable_mosaic.version = 11 : i64} {
  func.func @_cast_kernel(%arg0: i32, %arg1: memref<4x128xf32, #tpu.memory_space<vmem>>, %arg2: memref<4x128xi32, #tpu.memory_space<vmem>>) attributes {dimension_semantics = [#tpu.dimension_semantics<parallel>], iteration_bounds = array<i64: 1>, scalar_prefetch = 0 : i64, scratch_operands = 0 : i64, tpu.core_type = #tpu.core_type<tc>, window_params = [{transform_indices = @transform_0, window_bounds = array<i64: 4, 128>}, {transform_indices = @transform_1, window_bounds = array<i64: 4, 128>}]} {
    %c0 = arith.constant 0 : index
    %c0_0 = arith.constant 0 : index
    %0 = vector.load %arg1[%c0, %c0_0] : memref<4x128xf32, #tpu.memory_space<vmem>>, vector<4x128xf32>
    %1 = arith.fptosi %0 : vector<4x128xf32> to vector<4x128xi32>
    %c0_1 = arith.constant 0 : index
    %c0_2 = arith.constant 0 : index
    %2 = vector.load %arg2[%c0_1, %c0_2] : memref<4x128xi32, #tpu.memory_space<vmem>>, vector<4x128xi32>
    tpu.vector_store %arg2[%c0_1, %c0_2], %1 {strides = array<i32>} : memref<4x128xi32, #tpu.memory_space<vmem>>, vector<4x128xi32>,
    return
  }
  func.func @transform_0(%arg0: i32) -> (i32, i32) {
    %c0_i32 = arith.constant 0 : i32
    %c0_i32_0 = arith.constant 0 : i32
    return %arg0, %c0_i32 : i32, i32
  }
  func.func @transform_1(%arg0: i32) -> (i32, i32) {
    %c0_i32 = arith.constant 0 : i32
    %c0_i32_0 = arith.constant 0 : i32
    return %arg0, %c0_i32 : i32, i32
  }
}

</mosaic_0001>

<bundles_post_ra>
// kernel: tpu_custom_call.1
= control target key start
LH: loop header
LB: loop body
LE: loop exit
PB: predicated region body
PF: predicated region fallthrough
CT: control target
= control target key end

     0   :  { %6 = vsyncpa [#allocation3], 0  ;;  %s105_s0 = inlined_call_operand.hbm [shape: f32[4,128], index: 0, kind: input, shape index: {}]   ;;  %s106_s1 = inlined_call_operand.hbm [shape: s32[4,128], index: 1, kind: output, shape index: {}]  }
   0x1   :  { %7 = vsyncpa [#allocation4], 0  ;;  %s87_s6 = smov [#allocation2]  }
   0x2   :  { %s14_s7 = sshll.u32 %s87_s6, 4  ;;  %s15_s7 = int_to_ptr.vmem [resolvable:$true] %s14_s7 }
   0x3   :  { %s51_s8 = scalar_lea.vmem %s15_s7, 64  ;;  %p56_p1 = scmp.lt.s32.totalorder %s15_s7, %s15_s7 }
   0x4   :  { %p52_p0 = scmp.ne.s32.totalorder %s15_s7, %s51_s8  ;;  %p57_p2 = scmp.lt.s32.totalorder %s51_s8, %s51_s8 }
   0x6   :  { %p58_p3 = por %p57_p2, %p56_p1 }
   0x8   :  { %p59_p4 = pnand %p58_p3, %p52_p0 }
   0xa   :  { %62 = shalt.err (!%p59_p4)
}
   0xb   :  { %17 = dma.hbm_to_vmem [thread:$0]  %s105_s0, 64, %s15_s7, [#allocation3]  }
   0xc   :  { %83 = dma.done.wait [#allocation3], 64  }
   0xd   :  { %84 = vsyncadd [#allocation3], 4294967232  ;;  %v21_v0 = vld [vmem:[#allocation2] sm:$0xf]  ;;  %s88_s11 = smov [#allocation5]  }
   0xe   :  { %s30_s12 = sshll.u32 %s88_s11, 4  ;;  %v39_v1 = vtrunc.f32 %v21_v0  ;;  %s31_s12 = int_to_ptr.vmem [resolvable:$true] %s30_s12 }
   0xf   :  { %s63_s13 = scalar_lea.vmem %s31_s12, 64  ;;  %p68_p6 = scmp.lt.s32.totalorder %s31_s12, %s31_s12 }
  0x10   :  { %v40_v2 = vcvt.f32.s32 %v39_v1  ;;  %p64_p5 = scmp.ne.s32.totalorder %s31_s12, %s63_s13  ;;  %p69_p7 = scmp.lt.s32.totalorder %s63_s13, %s63_s13 }
  0x12   :  { %23 = vst [vmem:[#allocation5] sm:$0xf] %v40_v2  ;;  %p70_p8 = por %p69_p7, %p68_p6 }
  0x14   :  { %p71_p9 = pnand %p70_p8, %p64_p5 }
  0x16   :  { %74 = shalt.err (!%p71_p9)
}
  0x17   :  { %33 = dma.vmem_to_hbm [thread:$0]  %s31_s12, 64, %s106_s1, [#allocation4]  }
  0x18   :  { %85 = dma.done.wait [#allocation4], 64  }
  0x19   :  { %86 = vsyncadd [#allocation4], 4294967232 }
  0x1a   :  { %37 = vsyncpa [#allocation3], 1 }
  0x1b   :  { %38 = vsyncpa [#allocation4], 1 }

</bundles_post_ra>
